<compile_context>
chip_gen: v6e
topology: v6e:2x2x1
jax: 0.10.0
libtpu: 0.0.40
codegen_flags: <defaults>
</compile_context>

<pallas_src>
import functools

import jax
import jax.numpy as jnp
from jax import lax
from jax.experimental import pallas as pl
from jax.experimental.pallas import tpu as pltpu

EXPANSION = 4  # Bottleneck.expansion
_VMEM_LIMIT = 48 * 1024 * 1024        # <= 48 MiB: fits v7x (64 MiB physical) too
_MAX_RESIDENT_W_BYTES = 16 * 1024 * 1024


def _round_up(x, m):
    return ((x + m - 1) // m) * m


def _pick_tm(M):
    """M-tile: multiple of 256 (MXU-friendly on all gens), >=2 tiles when possible."""
    if M >= 4096:
        return 512
    if M >= 512:
        return 256
    return M          # tiny M: single full block (always a legal block shape)


# ----------------------------------------------------------------------------
# Pointwise (1x1-conv) GEMM kernels: single K step, resident weight, fused epilogue
# ----------------------------------------------------------------------------
def _pw_kernel(x_ref, w_ref, b_ref, o_ref, *, relu):
    y = jnp.dot(x_ref[...], w_ref[...], preferred_element_type=jnp.float32)
    y = y + b_ref[...]
    if relu:
        y = jnp.maximum(y, 0.0)
    o_ref[...] = y.astype(o_ref.dtype)


def _pw_res_kernel(x_ref, w_ref, b_ref, r_ref, o_ref):
    """conv3 + bn3 + identity residual + final ReLU."""
    y = jnp.dot(x_ref[...], w_ref[...], preferred_element_type=jnp.float32)
    y = y + b_ref[...] + r_ref[...].astype(jnp.float32)
    o_ref[...] = jnp.maximum(y, 0.0).astype(o_ref.dtype)


def _pw_ds_kernel(x_ref, w_ref, b_ref, xs_ref, wd_ref, bd_ref, o_ref):
    """conv3 + bn3 + fused downsample (1x1 stride-s conv + bn) + final ReLU."""
    y = jnp.dot(x_ref[...], w_ref[...], preferred_element_type=jnp.float32) + b_ref[...]
    r = jnp.dot(xs_ref[...], wd_ref[...], preferred_element_type=jnp.float32) + bd_ref[...]
    o_ref[...] = jnp.maximum(y + r, 0.0).astype(o_ref.dtype)


def pointwise_conv(x, w, b, *, relu=False, residual=None, ds=None,
                   out_dtype=jnp.bfloat16):
    """out = epilogue(x @ w + b), with the epilogue being one of:
         relu-or-identity | + residual, relu | + (xs @ wd + bd), relu.

    Full-K / full-N resident weight (constant index map -> DMA'd once),
    1-D grid over M tiles, no accumulator scratch.
    """
    M, K = x.shape
    Kw, N = w.shape
    assert K == Kw, (K, Kw)
    assert K * N * 2 <= _MAX_RESIDENT_W_BYTES, "weight too large for resident-K GEMM"
    # TODO(synk): add a K-split + f32-accumulator fallback for K beyond this guard.

    tm = _pick_tm(M)
    grid = (pl.cdiv(M, tm),)

    args = [x.astype(jnp.bfloat16), w, b.reshape(1, N).astype(jnp.float32)]
    in_specs = [
        pl.BlockSpec((tm, K), lambda i: (i, 0)),
        pl.BlockSpec((K, N), lambda i: (0, 0)),     # resident weight
        pl.BlockSpec((1, N), lambda i: (0, 0)),
    ]

    if ds is not None:
        xs, wd, bd = ds
        Ks = xs.shape[1]
        assert xs.shape[0] == M and wd.shape == (Ks, N)
        args += [xs.astype(jnp.bfloat16), wd, bd.reshape(1, N).astype(jnp.float32)]
        in_specs += [
            pl.BlockSpec((tm, Ks), lambda i: (i, 0)),
            pl.BlockSpec((Ks, N), lambda i: (0, 0)),  # resident downsample weight
            pl.BlockSpec((1, N), lambda i: (0, 0)),
        ]
        kernel = _pw_ds_kernel
    elif residual is not None:
        assert residual.shape == (M, N), (residual.shape, (M, N))
        args += [residual.astype(jnp.bfloat16)]
        in_specs += [pl.BlockSpec((tm, N), lambda i: (i, 0))]
        kernel = _pw_res_kernel
    else:
        kernel = functools.partial(_pw_kernel, relu=relu)

    return pl.pallas_call(
        kernel,
        out_shape=jax.ShapeDtypeStruct((M, N), out_dtype),
        grid=grid,
        in_specs=in_specs,
        out_specs=pl.BlockSpec((tm, N), lambda i: (i, 0)),
        compiler_params=pltpu.CompilerParams(
            dimension_semantics=("parallel",),
            vmem_limit_bytes=_VMEM_LIMIT),
    )(*args)


# ----------------------------------------------------------------------------
# conv2: 3x3 implicit-GEMM kernel (9 in-kernel tap dots, no im2col)
# ----------------------------------------------------------------------------
def _conv3x3_kernel(x0_ref, x1_ref, x2_ref, w_ref, b_ref, o_ref, *,
                    dil, wo, pre_gathered):
    rows = (x0_ref, x1_ref, x2_ref)          # three row-shifted halo windows (ki)
    cout = w_ref.shape[-1]
    acc = jnp.zeros((wo, cout), jnp.float32)
    for ki in range(3):
        for kj in range(3):
            if pre_gathered:
                # stride > 1: columns were gathered in XLA -> plain indexed load
                lhs = rows[ki][0, 0, kj]                               # (wo, cin)
            else:
                # stride == 1: static contiguous column window
                lhs = rows[ki][0, 0, kj * dil: kj * dil + wo, :]       # (wo, cin)
            acc = acc + jnp.dot(lhs, w_ref[ki * 3 + kj],
                                preferred_element_type=jnp.float32)
    y = jnp.maximum(acc + b_ref[...], 0.0)
    o_ref[0, 0] = y.astype(o_ref.dtype)


def conv3x3(x_nhwc, w2, b2, *, stride, dilation):
    """3x3 conv (padding=dilation, dilation, stride) + folded-BN bias + ReLU.

    x_nhwc: [N, H, W, C] bf16; w2: [9, C, Cout] tap-major bf16 (BN scale folded);
    b2: [Cout] f32.  Returns [N, Ho, Wo, Cout] bf16.
    """
    N, H, W, C = x_nhwc.shape
    s, d = stride, dilation
    Cout = w2.shape[-1]
    Ho = (H - 1) // s + 1
    Wo = (W - 1) // s + 1

    xp = jnp.pad(x_nhwc, ((0, 0), (d, d), (d, d), (0, 0)))   # [N, Hp, Wp, C]
    Hp, Wp = H + 2 * d, W + 2 * d

    pre_gathered = s != 1
    if pre_gathered:
        # XLA-side column gather (per-tap stride-s subsample); ~1.5x conv1 output
        # for s=2, and it keeps the kernel free of strided accesses.
        xin = jnp.stack(
            [xp[:, :, j * d: j * d + (Wo - 1) * s + 1: s, :] for j in range(3)],
            axis=2)                                           # [N, Hp, 3, Wo, C]
        x_specs = [
            pl.BlockSpec((1, 1, 3, Wo, C),
                         lambda n, ho, ki=ki: (n, ho * s + ki * d, 0, 0, 0))
            for ki in range(3)
        ]
    else:
        xin = xp                                              # [N, Hp, Wp, C]
        x_specs = [
            pl.BlockSpec((1, 1, Wp, C),
                         lambda n, ho, ki=ki: (n, ho * s + ki * d, 0, 0))
            for ki in range(3)
        ]

    kernel = functools.partial(_conv3x3_kernel, dil=d, wo=Wo,
                               pre_gathered=pre_gathered)
    return pl.pallas_call(
        kernel,
        out_shape=jax.ShapeDtypeStruct((N, Ho, Wo, Cout), jnp.bfloat16),
        grid=(N, Ho),
        in_specs=x_specs + [
            pl.BlockSpec((9, C, Cout), lambda n, ho: (0, 0, 0)),   # resident weight
            pl.BlockSpec((1, Cout), lambda n, ho: (0, 0)),
        ],
        out_specs=pl.BlockSpec((1, 1, Wo, Cout), lambda n, ho: (n, ho, 0, 0)),
        compiler_params=pltpu.CompilerParams(
            dimension_semantics=("parallel", "parallel"),
            vmem_limit_bytes=_VMEM_LIMIT),
    )(xin, xin, xin, w2, b2.reshape(1, Cout).astype(jnp.float32))


# ----------------------------------------------------------------------------
# Parameter construction (deterministic, synthetic) with BN folding done ONCE
# ----------------------------------------------------------------------------
def _init_conv(key, cout, cin, kh, kw):
    fan_in = cin * kh * kw
    return (jax.random.normal(key, (cout, cin, kh, kw), dtype=jnp.float32)
            * (2.0 / fan_in) ** 0.5)


def _init_bn(key, c, eps=1e-5):
    k1, k2, k3, k4 = jax.random.split(key, 4)
    gamma = 1.0 + 0.1 * jax.random.normal(k1, (c,), dtype=jnp.float32)
    beta = 0.1 * jax.random.normal(k2, (c,), dtype=jnp.float32)
    mean = 0.1 * jax.random.normal(k3, (c,), dtype=jnp.float32)
    var = 1.0 + 0.1 * jnp.abs(jax.random.normal(k4, (c,), dtype=jnp.float32))
    scale = gamma / jnp.sqrt(var + eps)
    bias = beta - mean * scale
    return scale, bias


def _fold_1x1(w, scale, bias):
    """[Cout,Cin,1,1] + BN -> ([Cin,Cout] bf16 scale-folded weight, [Cout] f32 bias)."""
    cout, cin = w.shape[:2]
    wmat = w.reshape(cout, cin).T * scale[None, :]
    return wmat.astype(jnp.bfloat16), bias.astype(jnp.float32)


def _fold_3x3(w, scale, bias):
    """[Cout,Cin,3,3] + BN -> ([9,Cin,Cout] tap-major bf16 weight, [Cout] f32 bias)."""
    cout, cin, kh, kw = w.shape
    wmat = jnp.transpose(w, (2, 3, 1, 0)).reshape(kh * kw, cin, cout)
    wmat = wmat * scale[None, None, :]
    return wmat.astype(jnp.bfloat16), bias.astype(jnp.float32)


def make_bottleneck_params(key, inplanes, planes, stride=1, dilation=1):
    keys = jax.random.split(key, 8)
    p = {"stride": stride, "dilation": dilation,
         "inplanes": inplanes, "planes": planes}

    w1 = _init_conv(keys[0], planes, inplanes, 1, 1)
    p["w1"], p["b1"] = _fold_1x1(w1, *_init_bn(keys[1], planes))

    w2 = _init_conv(keys[2], planes, planes, 3, 3)
    p["w2"], p["b2"] = _fold_3x3(w2, *_init_bn(keys[3], planes))

    w3 = _init_conv(keys[4], planes * EXPANSION, planes, 1, 1)
    p["w3"], p["b3"] = _fold_1x1(w3, *_init_bn(keys[5], planes * EXPANSION))

    # downsample = Conv2d(1x1, stride) + BN, created when shapes would mismatch
    if stride != 1 or inplanes != planes * EXPANSION:
        wd = _init_conv(keys[6], planes * EXPANSION, inplanes, 1, 1)
        p["wd"], p["bd"] = _fold_1x1(wd, *_init_bn(keys[7], planes * EXPANSION))
    return p


# ----------------------------------------------------------------------------
# Bottleneck forward pass
# ----------------------------------------------------------------------------
def bottleneck_forward(params, x_nchw):
    """x: [N, inplanes, H, W] f32 -> [N, 4*planes, Ho, Wo] f32."""
    stride, dilation = params["stride"], params["dilation"]
    planes = params["planes"]

    # bf16 BEFORE the layout transpose (halves the HBM traffic of that pass)
    x = jnp.transpose(x_nchw.astype(jnp.bfloat16), (0, 2, 3, 1))
    N, H, W, Cin = x.shape

    # conv1 (1x1) + bn1 + relu  -- plain resident-weight GEMM
    out1 = pointwise_conv(x.reshape(N * H * W, Cin), params["w1"], params["b1"],
                          relu=True)
    out1 = out1.reshape(N, H, W, planes)

    # conv2 (3x3, stride, padding=dilation, dilation) + bn2 + relu -- implicit GEMM
    out2 = conv3x3(out1, params["w2"], params["b2"],
                   stride=stride, dilation=dilation)
    _, Ho, Wo, _ = out2.shape
    out2 = out2.reshape(N * Ho * Wo, planes)

    # conv3 (1x1) + bn3 + residual add + final relu in ONE kernel
    if "wd" in params:
        xs = x[:, ::stride, ::stride, :].reshape(N * Ho * Wo, Cin)
        out = pointwise_conv(out2, params["w3"], params["b3"],
                             ds=(xs, params["wd"], params["bd"]),
                             out_dtype=jnp.float32)
    else:
        out = pointwise_conv(out2, params["w3"], params["b3"],
                             residual=x.reshape(N * H * W, Cin),
                             out_dtype=jnp.float32)

    out = out.reshape(N, Ho, Wo, planes * EXPANSION)
    return jnp.transpose(out, (0, 3, 1, 2))       # back to NCHW, f32


# ----------------------------------------------------------------------------
# Pure-JAX reference (same folded-BN weights, same bf16-rounded input)
# ----------------------------------------------------------------------------
def _reference_forward(params, x_nchw):
    s, d = params["stride"], params["dilation"]
    P = params["planes"]
    x = jnp.transpose(x_nchw, (0, 2, 3, 1)).astype(jnp.bfloat16).astype(jnp.float32)
    N, H, W, Cin = x.shape

    out = jnp.maximum(x.reshape(-1, Cin) @ params["w1"].astype(jnp.float32)
                      + params["b1"], 0.0).reshape(N, H, W, P)
    w2 = params["w2"].astype(jnp.float32).reshape(3, 3, P, P)
    out = lax.conv_general_dilated(out, w2, (s, s), [(d, d), (d, d)],
                                   rhs_dilation=(d, d),
                                   dimension_numbers=("NHWC", "HWIO", "NHWC"))
    out = jnp.maximum(out + params["b2"], 0.0)
    _, Ho, Wo, _ = out.shape
    out = out.reshape(-1, P) @ params["w3"].astype(jnp.float32) + params["b3"]
    if "wd" in params:
        xs = x[:, ::s, ::s, :].reshape(-1, Cin)
        res = xs @ params["wd"].astype(jnp.float32) + params["bd"]
    else:
        res = x.reshape(-1, Cin)
    out = jnp.maximum(out + res, 0.0).reshape(N, Ho, Wo, P * EXPANSION)
    return jnp.transpose(out, (0, 3, 1, 2))


if __name__ == "__main__":
    key = jax.random.PRNGKey(0)
    kp1, kp2, kp3, kx1, kx2, kx3 = jax.random.split(key, 6)

    cases = []
    # 1) downsample path: stride=2, channels 32 -> 64
    p1 = make_bottleneck_params(kp1, inplanes=32, planes=16, stride=2, dilation=1)
    x1 = jax.random.normal(kx1, (2, 32, 16, 16), dtype=jnp.float32)
    cases.append(("downsample_s2", p1, x1, (2, 64, 8, 8)))
    # 2) identity-residual path: stride=1, inplanes == 4*planes
    p2 = make_bottleneck_params(kp2, inplanes=64, planes=16, stride=1, dilation=1)
    x2 = jax.random.normal(kx2, (2, 64, 16, 16), dtype=jnp.float32)
    cases.append(("identity_s1", p2, x2, (2, 64, 16, 16)))
    # 3) dilated identity path (stride=1, dilation=2), as in dilated ResNet stages
    p3 = make_bottleneck_params(kp3, inplanes=64, planes=16, stride=1, dilation=2)
    x3 = jax.random.normal(kx3, (2, 64, 16, 16), dtype=jnp.float32)
    cases.append(("identity_d2", p3, x3, (2, 64, 16, 16)))

    for name, p, x, expect_shape in cases:
        out = jax.block_until_ready(bottleneck_forward(p, x))
        assert out.shape == expect_shape, (name, out.shape, expect_shape)
        assert bool(jnp.all(jnp.isfinite(out))), name
        assert bool(jnp.all(out >= 0)), name          # post-ReLU
        ref = _reference_forward(p, x)
        err = float(jnp.max(jnp.abs(out - ref)))
        scale = float(jnp.max(jnp.abs(ref)))
        assert err <= 0.1 + 0.08 * scale, (name, err, scale)

    print("KERNEL_OK")
</pallas_src>

<mosaic_0001>
module attributes {stable_mosaic.version = 11 : i64} {
  func.func @_pw_kernel(%arg0: i32, %arg1: memref<256x32xbf16, #tpu.memory_space<vmem>>, %arg2: memref<32x16xbf16, #tpu.memory_space<vmem>>, %arg3: memref<1x16xf32, #tpu.memory_space<vmem>>, %arg4: memref<256x16xbf16, #tpu.memory_space<vmem>>) attributes {dimension_semantics = [#tpu.dimension_semantics<parallel>], iteration_bounds = array<i64: 2>, scalar_prefetch = 0 : i64, scratch_operands = 0 : i64, tpu.core_type = #tpu.core_type<tc>, window_params = [{transform_indices = @transform_0, window_bounds = array<i64: 256, 32>}, {pipeline_mode = #tpu.pipeline_mode<synchronous>, transform_indices = @transform_1, window_bounds = array<i64: 32, 16>}, {pipeline_mode = #tpu.pipeline_mode<synchronous>, transform_indices = @transform_2, window_bounds = array<i64: 1, 16>}, {transform_indices = @transform_3, window_bounds = array<i64: 256, 16>}]} {
    %c0 = arith.constant 0 : index
    %c0_0 = arith.constant 0 : index
    %0 = vector.load %arg1[%c0, %c0_0] : memref<256x32xbf16, #tpu.memory_space<vmem>>, vector<256x32xbf16>
    %c0_1 = arith.constant 0 : index
    %c0_2 = arith.constant 0 : index
    %1 = vector.load %arg2[%c0_1, %c0_2] : memref<32x16xbf16, #tpu.memory_space<vmem>>, vector<32x16xbf16>
    %cst = arith.constant dense<0.000000e+00> : vector<256x16xf32>
    %2 = tpu.matmul %0, %1, %cst {dimension_numbers = #tpu.dot_dimension_numbers<[1], [0], [0], [1], [0, 0, 1, 1], [], []>} : vector<256x32xbf16>, vector<32x16xbf16>, vector<256x16xf32> -> vector<256x16xf32>
    %c0_3 = arith.constant 0 : index
    %c0_4 = arith.constant 0 : index
    %3 = vector.load %arg3[%c0_3, %c0_4] : memref<1x16xf32, #tpu.memory_space<vmem>>, vector<1x16xf32>
    %4 = vector.broadcast %3 : vector<1x16xf32> to vector<256x16xf32>
    %5 = arith.addf %2, %4 : vector<256x16xf32>
    %cst_5 = arith.constant 0.000000e+00 : f32
    %6 = vector.broadcast %cst_5 : f32 to vector<256x16xf32>
    %7 = arith.maximumf %5, %6 : vector<256x16xf32>
    %8 = arith.truncf %7 : vector<256x16xf32> to vector<256x16xbf16>
    %c0_6 = arith.constant 0 : index
    %c0_7 = arith.constant 0 : index
    %9 = vector.load %arg4[%c0_6, %c0_7] : memref<256x16xbf16, #tpu.memory_space<vmem>>, vector<256x16xbf16>
    tpu.vector_store %arg4[%c0_6, %c0_7], %8 {strides = array<i32>} : memref<256x16xbf16, #tpu.memory_space<vmem>>, vector<256x16xbf16>,
    return
  }
  func.func @transform_0(%arg0: i32) -> (i32, i32) {
    %c0_i32 = arith.constant 0 : i32
    %c0_i32_0 = arith.constant 0 : i32
    return %arg0, %c0_i32 : i32, i32
  }
  func.func @transform_1(%arg0: i32) -> (i32, i32) {
    %c0_i32 = arith.constant 0 : i32
    %c0_i32_0 = arith.constant 0 : i32
    %c0_i32_1 = arith.constant 0 : i32
    return %c0_i32, %c0_i32_0 : i32, i32
  }
  func.func @transform_2(%arg0: i32) -> (i32, i32) {
    %c0_i32 = arith.constant 0 : i32
    %c0_i32_0 = arith.constant 0 : i32
    %c0_i32_1 = arith.constant 0 : i32
    return %c0_i32, %c0_i32_0 : i32, i32
  }
  func.func @transform_3(%arg0: i32) -> (i32, i32) {
    %c0_i32 = arith.constant 0 : i32
    %c0_i32_0 = arith.constant 0 : i32
    return %arg0, %c0_i32 : i32, i32
  }
}

</mosaic_0001>

<bundles_post_ra>
// kernel: tpu_custom_call.1
= control target key start
LH: loop header
LB: loop body
LE: loop exit
PB: predicated region body
PF: predicated region fallthrough
CT: control target
= control target key end

     0   :  { %s991_s12 = smov 0   ;;  %s1158_s0 = inlined_call_operand.vmem [shape: bf16[512,32], index: 0, kind: input, shape index: {}]   ;;  %s1159_s1 = inlined_call_operand.vmem [shape: bf16[32,16], index: 1, kind: input, shape index: {}]   ;;  %s1160_s2 = inlined_call_operand.vmem [shape: f32[1,16], index: 2, kind: input, shape index: {}]   ;;  %s1161_s3 = inlined_call_operand.vmem [shape: bf16[512,16], index: 3, kind: output, shape index: {}]  }
   0x1 LB: > { %s769_s13 = sadd.s32 4294967295, %s969_s12   ;;  %p773_p0 = scmp.ge.s32.totalorder %s969_s12, 1  ;;  %s969_s12 = sphi %s991_s12, %s13_s12  }
   0x2   : > { %p138_p1 = scmp.lt.s32.totalorder %s969_s12, 3 }
   0x4   : > { %p139_p2 = pnand %p773_p0, %p138_p1 }
   0x5   : > { %s774_s16 = sshll.u32 (!%p139_p2), %s769_s13, 5 }
   0x6   : > { %142 = sbr.rel (%p139_p2) target bundleno = 250 (0xfa), region = 32  ;;  %p163_p3 = scmp.lt.s32.totalorder (!%p139_p2), %s774_s16, 63 }
   0xb   : > { %v945_v0 = vld [vmem:[%s1159_s1 + $0x8] sm:$0xff]   ;;  %v946_v1 = vld [vmem:[%s1159_s1] sm:$0xff]   ;;  %s1163_s16 = smov (!%p163_p3, %s774_s16), 63  ;;  %vm310_vm0 = vcmask 261120   ;;  %vm680_vm1 = vcmask 125952  }
   0xc   : > { %897 = vmatprep.subr.bf16.mxu0 %v945_v0  ;;  %933 = vmatprep.subr.bf16.mxu1 %v945_v0  ;;  %s775_s19 = sshll.u32 %s1163_s16, 2  ;;  %v1050_v18 = vld [vmem:[%s1160_s2] ss:$0 sm:$0xff] }
   0xd   : > { %898 = vmatpush3.bf16.msra.mxu0 %v945_v0  ;;  %935 = vmatpush3.bf16.msra.mxu1 %v945_v0  ;;  %s1013_s22 = scalar_lea.vmem %s1158_s0, %s775_s19  ;;  %s1060_s27 = scalar_lea.vmem %s1161_s3, %s775_s19 }
   0xe   : > { %899 = vmatprep.subr.bf16.mxu0 %v946_v1  ;;  %934 = vmatprep.subr.bf16.mxu1 %v946_v1  ;;  %v947_v2 = vld [vmem:[%s1013_s22] sm:$0xff]   ;;  %v949_v4 = vld [vmem:[%s1013_s22 + $0x8] sm:$0xff]   ;;  %v951_v6 = vld [vmem:[%s1013_s22 + $0x10] sm:$0xff]  }
   0xf   : > { %v948_v3 = vld [vmem:[%s1013_s22 + $0x40] sm:$0xff]   ;;  %901 = vmatprep.mubr.msk.bf16.mxu0 %vm310_vm0, %v947_v2  ;;  %v950_v5 = vld [vmem:[%s1013_s22 + $0x48] sm:$0xff]   ;;  %v952_v7 = vld [vmem:[%s1013_s22 + $0x50] sm:$0xff]  }
  0x10   : > { %917 = vmatprep.mubr.msk.bf16.mxu1 %vm310_vm0, %v948_v3  ;;  %v953_v8 = vld [vmem:[%s1013_s22 + $0x18] sm:$0xff]   ;;  %v955_v10 = vld [vmem:[%s1013_s22 + $0x20] sm:$0xff]   ;;  %v957_v12 = vld [vmem:[%s1013_s22 + $0x28] sm:$0xff]  }
  0x11   : > { %900 = vmatpush3.bf16.msra.mxu0 %v946_v1  ;;  %936 = vmatpush3.bf16.msra.mxu1 %v946_v1  ;;  %v954_v9 = vld [vmem:[%s1013_s22 + $0x58] sm:$0xff]   ;;  %v956_v11 = vld [vmem:[%s1013_s22 + $0x60] sm:$0xff]   ;;  %v958_v13 = vld [vmem:[%s1013_s22 + $0x68] sm:$0xff]  }
  0x12   : > { %v959_v14 = vld [vmem:[%s1013_s22 + $0x30] sm:$0xff]   ;;  %v961_v16 = vld [vmem:[%s1013_s22 + $0x38] sm:$0xff]  }
  0x13   : > { %v960_v15 = vld [vmem:[%s1013_s22 + $0x70] sm:$0xff]   ;;  %v962_v17 = vld [vmem:[%s1013_s22 + $0x78] sm:$0xff]  }
  0x14   : > { %902 = vmatmul.mubr.msk.bf16.vlgmr.msra.gmra.mxu0 %vm310_vm0, %v949_v4  ;;  %918 = vmatmul.mubr.msk.bf16.vlgmr.msra.gmra.mxu1 %vm310_vm0, %v950_v5 }
  0x15   : > { %905 = vmatprep.mubr.msk.bf16.mxu0 %vm310_vm0, %v951_v6  ;;  %921 = vmatprep.mubr.msk.bf16.mxu1 %vm310_vm0, %v952_v7 }
  0x1c   : > { %906 = vmatmul.mubr.msk.bf16.gmra.mxu0 %vm310_vm0, %v953_v8  ;;  %922 = vmatmul.mubr.msk.bf16.gmra.mxu1 %vm310_vm0, %v954_v9 }
  0x1d   : > { %909 = vmatprep.mubr.msk.bf16.mxu0 %vm310_vm0, %v955_v10  ;;  %925 = vmatprep.mubr.msk.bf16.mxu1 %vm310_vm0, %v956_v11 }
  0x24   : > { %910 = vmatmul.mubr.msk.bf16.gmra.mxu0 %vm310_vm0, %v957_v12  ;;  %926 = vmatmul.mubr.msk.bf16.gmra.mxu1 %vm310_vm0, %v958_v13 }
  0x25   : > { %913 = vmatprep.mubr.msk.bf16.mxu0 %vm310_vm0, %v959_v14  ;;  %929 = vmatprep.mubr.msk.bf16.mxu1 %vm310_vm0, %v960_v15 }
  0x2c   : > { %914 = vmatmul.mubr.msk.bf16.gmra.mxu0 %vm310_vm0, %v961_v16  ;;  %930 = vmatmul.mubr.msk.bf16.gmra.mxu1 %vm310_vm0, %v962_v17 }
  0xd4   : > { %v903_v19 = vpop.f32.mrf.mxu0  ;;  %v919_v21 = vpop.f32.mrf.mxu1 }
  0xd5   : > { %v402_v20 = vadd.f32 %v903_v19, %v1050_v18  ;;  %v466_v22 = vadd.f32 %v919_v21, %v1050_v18 }
  0xd6   : > { %v393_v23 = vpop.f32.mrf.mxu0  ;;  %v457_v26 = vpop.f32.mrf.mxu1 }
  0xd7   : > { %v522_v24 = vmax.f32 %v402_v20, 0.0  ;;  %v394_v25 = vadd.f32 %v1050_v18, %v393_v23  ;;  %v538_v27 = vmax.f32 %v466_v22, 0.0  ;;  %v458_v28 = vadd.f32 %v1050_v18, %v457_v26 }
  0xd8   : > { %v904_v29 = vpop.f32.mrf.mxu0  ;;  %v920_v33 = vpop.f32.mrf.mxu1 }
  0xd9   : > { %v849_v30 = vpack.c.bf16 %v522_v24, %v522_v24  ;;  %v520_v31 = vmax.f32 %v394_v25, 0.0  ;;  %v405_v32 = vadd.f32 %v904_v29, %v1050_v18  ;;  %v865_v34 = vpack.c.bf16 %v538_v27, %v538_v27 }
  0xda   : > { %v536_v35 = vmax.f32 %v458_v28, 0.0  ;;  %v469_v36 = vadd.f32 %v920_v33, %v1050_v18  ;;  %v396_v37 = vpop.f32.mrf.mxu0  ;;  %v460_v41 = vpop.f32.mrf.mxu1 }
  0xdb   : > { %683 = vst.msk [vmem:[%s1060_s27 + $0x8] sm:$0xf] %vm680_vm1, %v849_v30  ;;  %v847_v38 = vpack.c.bf16 %v520_v31, %v520_v31  ;;  %v523_v39 = vmax.f32 %v405_v32, 0.0  ;;  %v397_v40 = vadd.f32 %v1050_v18, %v396_v37  ;;  %699 = vst.msk [vmem:[%s1060_s27 + $0x48] sm:$0xf] %vm680_vm1, %v865_v34  ;;  %v461_v44 = vadd.f32 %v1050_v18, %v460_v41 }
  0xdc   : > { %v863_v42 = vpack.c.bf16 %v536_v35, %v536_v35  ;;  %v539_v43 = vmax.f32 %v469_v36, 0.0  ;;  %v907_v45 = vpop.f32.mrf.mxu0  ;;  %v923_v49 = vpop.f32.mrf.mxu1 }
  0xdd   : > { %681 = vst.msk [vmem:[%s1060_s27] sm:$0xf] %vm680_vm1, %v847_v38  ;;  %v850_v46 = vpack.c.bf16 %v523_v39, %v523_v39  ;;  %v521_v47 = vmax.f32 %v397_v40, 0.0  ;;  %v418_v48 = vadd.f32 %v907_v45, %v1050_v18  ;;  %v537_v51 = vmax.f32 %v461_v44, 0.0 }
  0xde   : > { %697 = vst.msk [vmem:[%s1060_s27 + $0x40] sm:$0xf] %vm680_vm1, %v863_v42  ;;  %v866_v50 = vpack.c.bf16 %v539_v43, %v539_v43  ;;  %v482_v52 = vadd.f32 %v923_v49, %v1050_v18  ;;  %v409_v53 = vpop.f32.mrf.mxu0  ;;  %v473_v57 = vpop.f32.mrf.mxu1 }
  0xdf   : > { %684 = vst.msk [vmem:[%s1060_s27 + $0xc] sm:$0xf] %vm680_vm1, %v850_v46  ;;  %v848_v54 = vpack.c.bf16 %v521_v47, %v521_v47  ;;  %v526_v55 = vmax.f32 %v418_v48, 0.0  ;;  %v410_v56 = vadd.f32 %v1050_v18, %v409_v53  ;;  %v864_v58 = vpack.c.bf16 %v537_v51, %v537_v51 }
  0xe0   : > { %700 = vst.msk [vmem:[%s1060_s27 + $0x4c] sm:$0xf] %vm680_vm1, %v866_v50  ;;  %v542_v59 = vmax.f32 %v482_v52, 0.0  ;;  %v474_v60 = vadd.f32 %v1050_v18, %v473_v57  ;;  %v908_v61 = vpop.f32.mrf.mxu0  ;;  %v924_v1 = vpop.f32.mrf.mxu1 }
  0xe1   : > { %682 = vst.msk [vmem:[%s1060_s27 + $0x4] sm:$0xf] %vm680_vm1, %v848_v54  ;;  %v853_v62 = vpack.c.bf16 %v526_v55, %v526_v55  ;;  %v524_v63 = vmax.f32 %v410_v56, 0.0  ;;  %v421_v0 = vadd.f32 %v908_v61, %v1050_v18  ;;  %698 = vst.msk [vmem:[%s1060_s27 + $0x44] sm:$0xf] %vm680_vm1, %v864_v58  ;;  %v485_v4 = vadd.f32 %v924_v1, %v1050_v18 }
  0xe2   : > { %v869_v2 = vpack.c.bf16 %v542_v59, %v542_v59  ;;  %v540_v3 = vmax.f32 %v474_v60, 0.0  ;;  %v412_v5 = vpop.f32.mrf.mxu0  ;;  %v476_v9 = vpop.f32.mrf.mxu1 }
  0xe3   : > { %687 = vst.msk [vmem:[%s1060_s27 + $0x18] sm:$0xf] %vm680_vm1, %v853_v62  ;;  %v851_v6 = vpack.c.bf16 %v524_v63, %v524_v63  ;;  %v527_v7 = vmax.f32 %v421_v0, 0.0  ;;  %v413_v8 = vadd.f32 %v1050_v18, %v412_v5  ;;  %v543_v11 = vmax.f32 %v485_v4, 0.0 }
  0xe4   : > { %703 = vst.msk [vmem:[%s1060_s27 + $0x58] sm:$0xf] %vm680_vm1, %v869_v2  ;;  %v867_v10 = vpack.c.bf16 %v540_v3, %v540_v3  ;;  %v477_v12 = vadd.f32 %v1050_v18, %v476_v9  ;;  %v911_v13 = vpop.f32.mrf.mxu0  ;;  %v927_v17 = vpop.f32.mrf.mxu1 }
  0xe5   : > { %685 = vst.msk [vmem:[%s1060_s27 + $0x10] sm:$0xf] %vm680_vm1, %v851_v6  ;;  %v854_v14 = vpack.c.bf16 %v527_v7, %v527_v7  ;;  %v525_v15 = vmax.f32 %v413_v8, 0.0  ;;  %v434_v16 = vadd.f32 %v911_v13, %v1050_v18  ;;  %v870_v19 = vpack.c.bf16 %v543_v11, %v543_v11 }
  0xe6   : > { %701 = vst.msk [vmem:[%s1060_s27 + $0x50] sm:$0xf] %vm680_vm1, %v867_v10  ;;  %v541_v20 = vmax.f32 %v477_v12, 0.0  ;;  %v498_v21 = vadd.f32 %v927_v17, %v1050_v18  ;;  %v425_v22 = vpop.f32.mrf.mxu0  ;;  %v489_v26 = vpop.f32.mrf.mxu1 }
  0xe7   : > { %688 = vst.msk [vmem:[%s1060_s27 + $0x1c] sm:$0xf] %vm680_vm1, %v854_v14  ;;  %v852_v23 = vpack.c.bf16 %v525_v15, %v525_v15  ;;  %v530_v24 = vmax.f32 %v434_v16, 0.0  ;;  %v426_v25 = vadd.f32 %v1050_v18, %v425_v22  ;;  %704 = vst.msk [vmem:[%s1060_s27 + $0x5c] sm:$0xf] %vm680_vm1, %v870_v19  ;;  %v490_v29 = vadd.f32 %v1050_v18, %v489_v26 }
  0xe8   : > { %v868_v27 = vpack.c.bf16 %v541_v20, %v541_v20  ;;  %v546_v28 = vmax.f32 %v498_v21, 0.0  ;;  %v912_v30 = vpop.f32.mrf.mxu0  ;;  %v928_v34 = vpop.f32.mrf.mxu1 }
  0xe9   : > { %686 = vst.msk [vmem:[%s1060_s27 + $0x14] sm:$0xf] %vm680_vm1, %v852_v23  ;;  %v857_v31 = vpack.c.bf16 %v530_v24, %v530_v24  ;;  %v528_v32 = vmax.f32 %v426_v25, 0.0  ;;  %v437_v33 = vadd.f32 %v912_v30, %v1050_v18  ;;  %v544_v36 = vmax.f32 %v490_v29, 0.0 }
  0xea   : > { %702 = vst.msk [vmem:[%s1060_s27 + $0x54] sm:$0xf] %vm680_vm1, %v868_v27  ;;  %v873_v35 = vpack.c.bf16 %v546_v28, %v546_v28  ;;  %v501_v37 = vadd.f32 %v928_v34, %v1050_v18  ;;  %v428_v38 = vpop.f32.mrf.mxu0  ;;  %v492_v42 = vpop.f32.mrf.mxu1 }
  0xeb   : > { %691 = vst.msk [vmem:[%s1060_s27 + $0x28] sm:$0xf] %vm680_vm1, %v857_v31  ;;  %v855_v39 = vpack.c.bf16 %v528_v32, %v528_v32  ;;  %v531_v40 = vmax.f32 %v437_v33, 0.0  ;;  %v429_v41 = vadd.f32 %v1050_v18, %v428_v38  ;;  %v871_v43 = vpack.c.bf16 %v544_v36, %v544_v36 }
  0xec   : > { %707 = vst.msk [vmem:[%s1060_s27 + $0x68] sm:$0xf] %vm680_vm1, %v873_v35  ;;  %v547_v44 = vmax.f32 %v501_v37, 0.0  ;;  %v493_v45 = vadd.f32 %v1050_v18, %v492_v42  ;;  %v915_v46 = vpop.f32.mrf.mxu0  ;;  %v931_v50 = vpop.f32.mrf.mxu1 }
  0xed   : > { %689 = vst.msk [vmem:[%s1060_s27 + $0x20] sm:$0xf] %vm680_vm1, %v855_v39  ;;  %v858_v47 = vpack.c.bf16 %v531_v40, %v531_v40  ;;  %v529_v48 = vmax.f32 %v429_v41, 0.0  ;;  %v450_v49 = vadd.f32 %v915_v46, %v1050_v18  ;;  %705 = vst.msk [vmem:[%s1060_s27 + $0x60] sm:$0xf] %vm680_vm1, %v871_v43  ;;  %v514_v53 = vadd.f32 %v931_v50, %v1050_v18 }
  0xee   : > { %v874_v51 = vpack.c.bf16 %v547_v44, %v547_v44  ;;  %v545_v52 = vmax.f32 %v493_v45, 0.0  ;;  %v441_v54 = vpop.f32.mrf.mxu0  ;;  %v505_v58 = vpop.f32.mrf.mxu1 }
  0xef   : > { %692 = vst.msk [vmem:[%s1060_s27 + $0x2c] sm:$0xf] %vm680_vm1, %v858_v47  ;;  %v856_v55 = vpack.c.bf16 %v529_v48, %v529_v48  ;;  %v534_v56 = vmax.f32 %v450_v49, 0.0  ;;  %v442_v57 = vadd.f32 %v1050_v18, %v441_v54  ;;  %v550_v60 = vmax.f32 %v514_v53, 0.0 }
  0xf0   : > { %708 = vst.msk [vmem:[%s1060_s27 + $0x6c] sm:$0xf] %vm680_vm1, %v874_v51  ;;  %v872_v59 = vpack.c.bf16 %v545_v52, %v545_v52  ;;  %v506_v61 = vadd.f32 %v1050_v18, %v505_v58  ;;  %v916_v62 = vpop.f32.mrf.mxu0  ;;  %v932_v2 = vpop.f32.mrf.mxu1 }
  0xf1   : > { %690 = vst.msk [vmem:[%s1060_s27 + $0x24] sm:$0xf] %vm680_vm1, %v856_v55  ;;  %v861_v63 = vpack.c.bf16 %v534_v56, %v534_v56  ;;  %v532_v0 = vmax.f32 %v442_v57, 0.0  ;;  %v453_v1 = vadd.f32 %v916_v62, %v1050_v18  ;;  %v877_v3 = vpack.c.bf16 %v550_v60, %v550_v60 }
  0xf2   : > { %706 = vst.msk [vmem:[%s1060_s27 + $0x64] sm:$0xf] %vm680_vm1, %v872_v59  ;;  %v548_v4 = vmax.f32 %v506_v61, 0.0  ;;  %v517_v5 = vadd.f32 %v932_v2, %v1050_v18  ;;  %v444_v6 = vpop.f32.mrf.mxu0  ;;  %v508_v10 = vpop.f32.mrf.mxu1 }
  0xf3   : > { %695 = vst.msk [vmem:[%s1060_s27 + $0x38] sm:$0xf] %vm680_vm1, %v861_v63  ;;  %v859_v7 = vpack.c.bf16 %v532_v0, %v532_v0  ;;  %v535_v8 = vmax.f32 %v453_v1, 0.0  ;;  %v445_v9 = vadd.f32 %v1050_v18, %v444_v6  ;;  %711 = vst.msk [vmem:[%s1060_s27 + $0x78] sm:$0xf] %vm680_vm1, %v877_v3  ;;  %v509_v13 = vadd.f32 %v1050_v18, %v508_v10 }
  0xf4   : > { %v875_v11 = vpack.c.bf16 %v548_v4, %v548_v4  ;;  %v551_v12 = vmax.f32 %v517_v5, 0.0 }
  0xf5   : > { %693 = vst.msk [vmem:[%s1060_s27 + $0x30] sm:$0xf] %vm680_vm1, %v859_v7  ;;  %v862_v14 = vpack.c.bf16 %v535_v8, %v535_v8  ;;  %v533_v15 = vmax.f32 %v445_v9, 0.0  ;;  %v549_v17 = vmax.f32 %v509_v13, 0.0 }
  0xf6   : > { %709 = vst.msk [vmem:[%s1060_s27 + $0x70] sm:$0xf] %vm680_vm1, %v875_v11  ;;  %v878_v16 = vpack.c.bf16 %v551_v12, %v551_v12 }
  0xf7   : > { %696 = vst.msk [vmem:[%s1060_s27 + $0x3c] sm:$0xf] %vm680_vm1, %v862_v14  ;;  %v860_v19 = vpack.c.bf16 %v533_v15, %v533_v15  ;;  %v876_v20 = vpack.c.bf16 %v549_v17, %v549_v17 }
  0xf8   : > { %712 = vst.msk [vmem:[%s1060_s27 + $0x7c] sm:$0xf] %vm680_vm1, %v878_v16 }
  0xf9   : > { %694 = vst.msk [vmem:[%s1060_s27 + $0x34] sm:$0xf] %vm680_vm1, %v860_v19  ;;  %710 = vst.msk [vmem:[%s1060_s27 + $0x74] sm:$0xf] %vm680_vm1, %v876_v20 }
  0xfa PF: > { %s13_s12 = sadd.s32 1, %s969_s12  }
  0xfb   : > { %p10_p4 = scmp.ge.s32.totalorder %s13_s12, 4  }
  0xfd   :  { %12 = sbr.rel (!%p10_p4) target bundleno = 1 (0x1), region = 62 }

</bundles_post_ra>
